<compile_context>
chip_gen: v7x
topology: tpu7x:2x2x1
jax: 0.10.0
libtpu: 0.0.40
codegen_flags: <defaults>
</compile_context>

<pallas_src>
import jax
import jax.numpy as jnp
from jax.experimental import pallas as pl
from jax.experimental.pallas import tpu as pltpu

EPS = 1e-6
_LANES = 128


def _round_up(v, m):
    return -(-v // m) * m


def _saturation_kernel(x_ref, img_ref, out_ref):
    # x_ref:   (N,) f32 in SMEM (scalar prefetch)
    # img_ref: (1, 3, TS, 128) in VMEM (f32 or bf16 storage)
    # out_ref: (1, 3, TS, 128) in VMEM (same dtype as the input image)
    b = pl.program_id(0)
    xv = x_ref[b]                      # scalar saturation argument for this batch
    odt = out_ref.dtype

    r = img_ref[0, 0].astype(jnp.float32)      # dense (TS, 128) tiles, f32 math
    g = img_ref[0, 1].astype(jnp.float32)
    bl = img_ref[0, 2].astype(jnp.float32)

    cmin = jnp.minimum(jnp.minimum(r, g), bl)
    cmax = jnp.maximum(jnp.maximum(r, g), bl)
    var = cmax - cmin
    ran = cmax + cmin
    mean = ran * 0.5

    @pl.when(xv >= 0.0)
    def _pos():
        # s = var / (ran + eps)  if mean < 0.5  else  var / (2 - ran + eps)
        # -> one select + one EUP reciprocal instead of two divides.
        denom = jnp.where(mean < 0.5, ran, 2.0 - ran) + EPS
        s = var * pl.reciprocal(denom, approx=True)
        # Original:  m = (x + s > 1); a_pos = s*m + (1-x)*(1-m)  ==  max(s, 1-x).
        # thresh is a hoisted scalar, so this is a single vector max.
        thresh = 1.0 - xv
        a_pos = jnp.maximum(s, thresh) + EPS
        # 1 / a_pos via EUP approx reciprocal + one Newton refinement step
        # (cheaper than the exact f32 divide expansion, ~f32 accuracy).
        inv = pl.reciprocal(a_pos, approx=True)
        inv = inv * (2.0 - a_pos * inv)
        # out = img + (img - mean) * (1/a_pos - 1)  ==  mean + (img - mean) / a_pos
        out_ref[0, 0] = jnp.clip(mean + (r - mean) * inv, 0.0, 1.0).astype(odt)
        out_ref[0, 1] = jnp.clip(mean + (g - mean) * inv, 0.0, 1.0).astype(odt)
        out_ref[0, 2] = jnp.clip(mean + (bl - mean) * inv, 0.0, 1.0).astype(odt)

    @pl.when(xv < 0.0)
    def _neg():
        a = 1.0 + xv
        out_ref[0, 0] = jnp.clip(mean + (r - mean) * a, 0.0, 1.0).astype(odt)
        out_ref[0, 1] = jnp.clip(mean + (g - mean) * a, 0.0, 1.0).astype(odt)
        out_ref[0, 2] = jnp.clip(mean + (bl - mean) * a, 0.0, 1.0).astype(odt)


def saturation_filter(image, x, *, block_rows=1024):
    """image: (N, 3, H, W) in [0, 1] (f32 or bf16); x: (N, 1, 1, 1) in [-1, 1]."""
    n, c, h, w = image.shape
    assert c == 3, "SaturationFilter expects RGB (3 channels)"
    assert block_rows % 8 == 0

    # Keep the caller's dtype end-to-end (bf16 halves HBM traffic on this
    # bandwidth-bound op); math is f32 inside the kernel.
    if image.dtype not in (jnp.dtype(jnp.float32), jnp.dtype(jnp.bfloat16)):
        image = image.astype(jnp.float32)
    io_dtype = image.dtype

    hw = h * w
    pad = (-hw) % _LANES
    img_flat = image.reshape(n, c, hw)
    if pad:
        img_flat = jnp.pad(img_flat, ((0, 0), (0, 0), (0, pad)))
    rows = (hw + pad) // _LANES
    img4 = img_flat.reshape(n, c, rows, _LANES)

    # Block sublane extent: as big as block_rows allows, multiple of 8; ragged
    # trailing rows become a masked partial last block (no array padding).
    ts = min(block_rows, _round_up(rows, 8))
    if n == 1 and rows > 8:
        # Guarantee >= 2 grid steps so both v7x TensorCores get work on
        # single-image calls.
        ts = min(ts, _round_up(-(-rows // 2), 8))
    if ts >= rows:
        ts = rows          # one full-extent block (tiling rule: equals full dim)
    grid_s = pl.cdiv(rows, ts)

    x_flat = x.reshape(n).astype(jnp.float32)

    # Explicit scoped-VMEM budget with headroom: double-buffered in + out at
    # the I/O dtype plus ~16 live (ts, 128) f32 temporaries; capped well below
    # every generation's physical VMEM (v7x: 64 MiB per TC).
    io_bytes = c * ts * _LANES * jnp.dtype(io_dtype).itemsize
    vmem_limit = int(min(4 * io_bytes + 16 * ts * _LANES * 4 + (8 << 20), 48 << 20))

    out = pl.pallas_call(
        _saturation_kernel,
        out_shape=jax.ShapeDtypeStruct((n, c, rows, _LANES), io_dtype),
        grid_spec=pltpu.PrefetchScalarGridSpec(
            num_scalar_prefetch=1,                               # x -> SMEM
            grid=(n, grid_s),
            in_specs=[
                pl.BlockSpec((1, c, ts, _LANES), lambda i, j, xr: (i, 0, j, 0)),
            ],
            out_specs=pl.BlockSpec((1, c, ts, _LANES), lambda i, j, xr: (i, 0, j, 0)),
        ),
        compiler_params=pltpu.CompilerParams(
            dimension_semantics=("parallel", "parallel"),
            vmem_limit_bytes=vmem_limit),
    )(x_flat, img4)

    out = out.reshape(n, c, rows * _LANES)
    if pad:
        out = out[:, :, :hw]
    return out.reshape(n, c, h, w)


def _reference(image, x):
    # Pure-JAX reference mirroring the PyTorch forward (exact math).
    cmin = jnp.min(image, axis=1, keepdims=True)
    cmax = jnp.max(image, axis=1, keepdims=True)
    var = cmax - cmin
    ran = cmax + cmin
    mean = ran / 2
    is_positive = (x >= 0).astype(jnp.float32)
    m = (mean < 0.5).astype(jnp.float32)
    s = var / (ran + EPS) * m + var / (2 - ran + EPS) * (1 - m)
    m2 = ((x + s) > 1).astype(jnp.float32)
    a_pos = s * m2 + (1 - x) * (1 - m2)
    a_pos = 1 / (a_pos + EPS) - 1
    a_neg = 1 + x
    a = a_pos * is_positive + a_neg * (1 - is_positive)
    out = image * is_positive + mean * (1 - is_positive) + (image - mean) * a
    return jnp.clip(out, 0.0, 1.0)


if __name__ == "__main__":
    key = jax.random.PRNGKey(0)
    k1, k2, k3, k4 = jax.random.split(key, 4)

    # Module-spec shapes; x exercises both the x>=0 and x<0 branches.
    N, C, H, W = 2, 3, 16, 16
    image = jax.random.uniform(k1, (N, C, H, W), dtype=jnp.float32)          # [0, 1]
    x = jnp.array([0.62, -0.37], dtype=jnp.float32).reshape(N, 1, 1, 1)      # [-1, 1]

    out = jax.block_until_ready(saturation_filter(image, x))
    ref = _reference(image, x)
    assert out.shape == (N, C, H, W)
    # approx reciprocals -> slightly looser (intentional) tolerance.
    assert jnp.allclose(out, ref, atol=2e-3, rtol=1e-3), (
        "mismatch vs reference, max abs diff "
        f"{float(jnp.max(jnp.abs(out - ref)))}")

    # Ragged spatial size (H*W not a multiple of 128) exercises the pad/strip path.
    image2 = jax.random.uniform(k2, (N, C, 9, 13), dtype=jnp.float32)
    out2 = jax.block_until_ready(saturation_filter(image2, x))
    ref2 = _reference(image2, x)
    assert out2.shape == (N, C, 9, 13)
    assert jnp.allclose(out2, ref2, atol=2e-3, rtol=1e-3), (
        "ragged-shape mismatch, max abs diff "
        f"{float(jnp.max(jnp.abs(out2 - ref2)))}")

    # rows not a multiple of the block -> masked partial trailing block path.
    image3 = jax.random.uniform(k3, (N, C, 16, 80), dtype=jnp.float32)       # rows = 10
    out3 = jax.block_until_ready(saturation_filter(image3, x, block_rows=8))
    ref3 = _reference(image3, x)
    assert jnp.allclose(out3, ref3, atol=2e-3, rtol=1e-3), (
        "partial-block mismatch, max abs diff "
        f"{float(jnp.max(jnp.abs(out3 - ref3)))}")

    # n == 1 exercises the two-TensorCore grid split.
    image4 = jax.random.uniform(k4, (1, C, 32, 128), dtype=jnp.float32)      # rows = 32 -> 2 steps
    x4 = jnp.array([0.8], dtype=jnp.float32).reshape(1, 1, 1, 1)
    out4 = jax.block_until_ready(saturation_filter(image4, x4))
    ref4 = _reference(image4, x4)
    assert jnp.allclose(out4, ref4, atol=2e-3, rtol=1e-3), (
        "n==1 mismatch, max abs diff "
        f"{float(jnp.max(jnp.abs(out4 - ref4)))}")

    # bf16 I/O path: storage dtype preserved, f32 math in-kernel.
    img_bf16 = image.astype(jnp.bfloat16)
    out_bf = jax.block_until_ready(saturation_filter(img_bf16, x))
    assert out_bf.dtype == jnp.bfloat16
    ref_bf = _reference(img_bf16.astype(jnp.float32), x)
    assert jnp.allclose(out_bf.astype(jnp.float32), ref_bf, atol=2e-2), (
        "bf16 mismatch, max abs diff "
        f"{float(jnp.max(jnp.abs(out_bf.astype(jnp.float32) - ref_bf)))}")

    print("KERNEL_OK")
</pallas_src>

<mosaic_0001>
module attributes {stable_mosaic.version = 11 : i64} {
  func.func @_saturation_kernel(%arg0: i32, %arg1: i32, %arg2: memref<2xf32, #tpu.memory_space<smem>>, %arg3: memref<1x3x2x128xf32, #tpu.memory_space<vmem>>, %arg4: memref<1x3x2x128xf32, #tpu.memory_space<vmem>>) attributes {dimension_semantics = [#tpu.dimension_semantics<parallel>, #tpu.dimension_semantics<parallel>], iteration_bounds = array<i64: 2, 1>, scalar_prefetch = 1 : i64, scratch_operands = 0 : i64, tpu.core_type = #tpu.core_type<tc>, window_params = [{transform_indices = @transform_0, window_bounds = array<i64: 1, 3, 2, 128>}, {transform_indices = @transform_1, window_bounds = array<i64: 1, 3, 2, 128>}]} {
    %0 = arith.index_cast %arg0 : i32 to index
    %1 = memref.load %arg2[%0] : memref<2xf32, #tpu.memory_space<smem>>
    %c0 = arith.constant 0 : index
    %c0_0 = arith.constant 0 : index
    %c0_1 = arith.constant 0 : index
    %c0_2 = arith.constant 0 : index
    %2 = vector.load %arg3[%c0, %c0_0, %c0_1, %c0_2] : memref<1x3x2x128xf32, #tpu.memory_space<vmem>>, vector<1x1x2x128xf32>
    %3 = vector.shape_cast %2 : vector<1x1x2x128xf32> to vector<2x128xf32>
    %c0_3 = arith.constant 0 : index
    %c1 = arith.constant 1 : index
    %c0_4 = arith.constant 0 : index
    %c0_5 = arith.constant 0 : index
    %4 = vector.load %arg3[%c0_3, %c1, %c0_4, %c0_5] : memref<1x3x2x128xf32, #tpu.memory_space<vmem>>, vector<1x1x2x128xf32>
    %5 = vector.shape_cast %4 : vector<1x1x2x128xf32> to vector<2x128xf32>
    %c0_6 = arith.constant 0 : index
    %c2 = arith.constant 2 : index
    %c0_7 = arith.constant 0 : index
    %c0_8 = arith.constant 0 : index
    %6 = vector.load %arg3[%c0_6, %c2, %c0_7, %c0_8] : memref<1x3x2x128xf32, #tpu.memory_space<vmem>>, vector<1x1x2x128xf32>
    %7 = vector.shape_cast %6 : vector<1x1x2x128xf32> to vector<2x128xf32>
    %8 = arith.minimumf %3, %5 : vector<2x128xf32>
    %9 = arith.minimumf %8, %7 : vector<2x128xf32>
    %10 = arith.maximumf %3, %5 : vector<2x128xf32>
    %11 = arith.maximumf %10, %7 : vector<2x128xf32>
    %12 = arith.subf %11, %9 : vector<2x128xf32>
    %13 = arith.addf %11, %9 : vector<2x128xf32>
    %cst = arith.constant 5.000000e-01 : f32
    %14 = vector.broadcast %cst : f32 to vector<2x128xf32>
    %15 = arith.mulf %13, %14 : vector<2x128xf32>
    %cst_9 = arith.constant 0.000000e+00 : f32
    %16 = arith.cmpf oge, %1, %cst_9 : f32
    %17 = arith.extui %16 : i1 to i32
    %c0_i32 = arith.constant 0 : i32
    %18 = arith.cmpi ne, %17, %c0_i32 : i32
    scf.if %18 {
      %cst_12 = arith.constant 5.000000e-01 : f32
      %22 = vector.broadcast %cst_12 : f32 to vector<2x128xf32>
      %23 = arith.cmpf olt, %15, %22 : vector<2x128xf32>
      %cst_13 = arith.constant 2.000000e+00 : f32
      %24 = vector.broadcast %cst_13 : f32 to vector<2x128xf32>
      %25 = arith.subf %24, %13 : vector<2x128xf32>
      %26 = arith.select %23, %13, %25 : vector<2x128xi1>, vector<2x128xf32>
      %cst_14 = arith.constant 9.99999997E-7 : f32
      %27 = vector.broadcast %cst_14 : f32 to vector<2x128xf32>
      %28 = arith.addf %26, %27 : vector<2x128xf32>
      %29 = tpu.reciprocal %28 {approx = true} : vector<2x128xf32> -> vector<2x128xf32>
      %30 = arith.mulf %12, %29 : vector<2x128xf32>
      %cst_15 = arith.constant 1.000000e+00 : f32
      %31 = arith.subf %cst_15, %1 : f32
      %32 = vector.broadcast %31 : f32 to vector<2x128xf32>
      %33 = arith.maximumf %30, %32 : vector<2x128xf32>
      %cst_16 = arith.constant 9.99999997E-7 : f32
      %34 = vector.broadcast %cst_16 : f32 to vector<2x128xf32>
      %35 = arith.addf %33, %34 : vector<2x128xf32>
      %36 = tpu.reciprocal %35 {approx = true} : vector<2x128xf32> -> vector<2x128xf32>
      %37 = arith.mulf %35, %36 : vector<2x128xf32>
      %cst_17 = arith.constant 2.000000e+00 : f32
      %38 = vector.broadcast %cst_17 : f32 to vector<2x128xf32>
      %39 = arith.subf %38, %37 : vector<2x128xf32>
      %40 = arith.mulf %36, %39 : vector<2x128xf32>
      %41 = arith.subf %3, %15 : vector<2x128xf32>
      %42 = arith.mulf %41, %40 : vector<2x128xf32>
      %43 = arith.addf %15, %42 : vector<2x128xf32>
      %cst_18 = arith.constant 0.000000e+00 : f32
      %cst_19 = arith.constant 1.000000e+00 : f32
      %44 = vector.broadcast %cst_18 : f32 to vector<2x128xf32>
      %45 = arith.maximumf %44, %43 : vector<2x128xf32>
      %46 = vector.broadcast %cst_19 : f32 to vector<2x128xf32>
      %47 = arith.minimumf %46, %45 : vector<2x128xf32>
      %c0_20 = arith.constant 0 : index
      %c0_21 = arith.constant 0 : index
      %c0_22 = arith.constant 0 : index
      %c0_23 = arith.constant 0 : index
      %48 = vector.load %arg4[%c0_20, %c0_21, %c0_22, %c0_23] : memref<1x3x2x128xf32, #tpu.memory_space<vmem>>, vector<1x1x2x128xf32>
      %49 = vector.shape_cast %48 : vector<1x1x2x128xf32> to vector<2x128xf32>
      %50 = vector.shape_cast %47 : vector<2x128xf32> to vector<1x1x2x128xf32>
      tpu.vector_store %arg4[%c0_20, %c0_21, %c0_22, %c0_23], %50 {strides = array<i32>} : memref<1x3x2x128xf32, #tpu.memory_space<vmem>>, vector<1x1x2x128xf32>,
      %51 = arith.subf %5, %15 : vector<2x128xf32>
      %52 = arith.mulf %51, %40 : vector<2x128xf32>
      %53 = arith.addf %15, %52 : vector<2x128xf32>
      %cst_24 = arith.constant 0.000000e+00 : f32
      %cst_25 = arith.constant 1.000000e+00 : f32
      %54 = vector.broadcast %cst_24 : f32 to vector<2x128xf32>
      %55 = arith.maximumf %54, %53 : vector<2x128xf32>
      %56 = vector.broadcast %cst_25 : f32 to vector<2x128xf32>
      %57 = arith.minimumf %56, %55 : vector<2x128xf32>
      %c0_26 = arith.constant 0 : index
      %c1_27 = arith.constant 1 : index
      %c0_28 = arith.constant 0 : index
      %c0_29 = arith.constant 0 : index
      %58 = vector.load %arg4[%c0_26, %c1_27, %c0_28, %c0_29] : memref<1x3x2x128xf32, #tpu.memory_space<vmem>>, vector<1x1x2x128xf32>
      %59 = vector.shape_cast %58 : vector<1x1x2x128xf32> to vector<2x128xf32>
      %60 = vector.shape_cast %57 : vector<2x128xf32> to vector<1x1x2x128xf32>
      tpu.vector_store %arg4[%c0_26, %c1_27, %c0_28, %c0_29], %60 {strides = array<i32>} : memref<1x3x2x128xf32, #tpu.memory_space<vmem>>, vector<1x1x2x128xf32>,
      %61 = arith.subf %7, %15 : vector<2x128xf32>
      %62 = arith.mulf %61, %40 : vector<2x128xf32>
      %63 = arith.addf %15, %62 : vector<2x128xf32>
      %cst_30 = arith.constant 0.000000e+00 : f32
      %cst_31 = arith.constant 1.000000e+00 : f32
      %64 = vector.broadcast %cst_30 : f32 to vector<2x128xf32>
      %65 = arith.maximumf %64, %63 : vector<2x128xf32>
      %66 = vector.broadcast %cst_31 : f32 to vector<2x128xf32>
      %67 = arith.minimumf %66, %65 : vector<2x128xf32>
      %c0_32 = arith.constant 0 : index
      %c2_33 = arith.constant 2 : index
      %c0_34 = arith.constant 0 : index
      %c0_35 = arith.constant 0 : index
      %68 = vector.load %arg4[%c0_32, %c2_33, %c0_34, %c0_35] : memref<1x3x2x128xf32, #tpu.memory_space<vmem>>, vector<1x1x2x128xf32>
      %69 = vector.shape_cast %68 : vector<1x1x2x128xf32> to vector<2x128xf32>
      %70 = vector.shape_cast %67 : vector<2x128xf32> to vector<1x1x2x128xf32>
      tpu.vector_store %arg4[%c0_32, %c2_33, %c0_34, %c0_35], %70 {strides = array<i32>} : memref<1x3x2x128xf32, #tpu.memory_space<vmem>>, vector<1x1x2x128xf32>,
    } else {
    }
    %cst_10 = arith.constant 0.000000e+00 : f32
    %19 = arith.cmpf olt, %1, %cst_10 : f32
    %20 = arith.extui %19 : i1 to i32
    %c0_i32_11 = arith.constant 0 : i32
    %21 = arith.cmpi ne, %20, %c0_i32_11 : i32
    scf.if %21 {
      %cst_12 = arith.constant 1.000000e+00 : f32
      %22 = arith.addf %cst_12, %1 : f32
      %23 = arith.subf %3, %15 : vector<2x128xf32>
      %24 = vector.broadcast %22 : f32 to vector<2x128xf32>
      %25 = arith.mulf %23, %24 : vector<2x128xf32>
      %26 = arith.addf %15, %25 : vector<2x128xf32>
      %cst_13 = arith.constant 0.000000e+00 : f32
      %cst_14 = arith.constant 1.000000e+00 : f32
      %27 = vector.broadcast %cst_13 : f32 to vector<2x128xf32>
      %28 = arith.maximumf %27, %26 : vector<2x128xf32>
      %29 = vector.broadcast %cst_14 : f32 to vector<2x128xf32>
      %30 = arith.minimumf %29, %28 : vector<2x128xf32>
      %c0_15 = arith.constant 0 : index
      %c0_16 = arith.constant 0 : index
      %c0_17 = arith.constant 0 : index
      %c0_18 = arith.constant 0 : index
      %31 = vector.load %arg4[%c0_15, %c0_16, %c0_17, %c0_18] : memref<1x3x2x128xf32, #tpu.memory_space<vmem>>, vector<1x1x2x128xf32>
      %32 = vector.shape_cast %31 : vector<1x1x2x128xf32> to vector<2x128xf32>
      %33 = vector.shape_cast %30 : vector<2x128xf32> to vector<1x1x2x128xf32>
      tpu.vector_store %arg4[%c0_15, %c0_16, %c0_17, %c0_18], %33 {strides = array<i32>} : memref<1x3x2x128xf32, #tpu.memory_space<vmem>>, vector<1x1x2x128xf32>,
      %34 = arith.subf %5, %15 : vector<2x128xf32>
      %35 = vector.broadcast %22 : f32 to vector<2x128xf32>
      %36 = arith.mulf %34, %35 : vector<2x128xf32>
      %37 = arith.addf %15, %36 : vector<2x128xf32>
      %cst_19 = arith.constant 0.000000e+00 : f32
      %cst_20 = arith.constant 1.000000e+00 : f32
      %38 = vector.broadcast %cst_19 : f32 to vector<2x128xf32>
      %39 = arith.maximumf %38, %37 : vector<2x128xf32>
      %40 = vector.broadcast %cst_20 : f32 to vector<2x128xf32>
      %41 = arith.minimumf %40, %39 : vector<2x128xf32>
      %c0_21 = arith.constant 0 : index
      %c1_22 = arith.constant 1 : index
      %c0_23 = arith.constant 0 : index
      %c0_24 = arith.constant 0 : index
      %42 = vector.load %arg4[%c0_21, %c1_22, %c0_23, %c0_24] : memref<1x3x2x128xf32, #tpu.memory_space<vmem>>, vector<1x1x2x128xf32>
      %43 = vector.shape_cast %42 : vector<1x1x2x128xf32> to vector<2x128xf32>
      %44 = vector.shape_cast %41 : vector<2x128xf32> to vector<1x1x2x128xf32>
      tpu.vector_store %arg4[%c0_21, %c1_22, %c0_23, %c0_24], %44 {strides = array<i32>} : memref<1x3x2x128xf32, #tpu.memory_space<vmem>>, vector<1x1x2x128xf32>,
      %45 = arith.subf %7, %15 : vector<2x128xf32>
      %46 = vector.broadcast %22 : f32 to vector<2x128xf32>
      %47 = arith.mulf %45, %46 : vector<2x128xf32>
      %48 = arith.addf %15, %47 : vector<2x128xf32>
      %cst_25 = arith.constant 0.000000e+00 : f32
      %cst_26 = arith.constant 1.000000e+00 : f32
      %49 = vector.broadcast %cst_25 : f32 to vector<2x128xf32>
      %50 = arith.maximumf %49, %48 : vector<2x128xf32>
      %51 = vector.broadcast %cst_26 : f32 to vector<2x128xf32>
      %52 = arith.minimumf %51, %50 : vector<2x128xf32>
      %c0_27 = arith.constant 0 : index
      %c2_28 = arith.constant 2 : index
      %c0_29 = arith.constant 0 : index
      %c0_30 = arith.constant 0 : index
      %53 = vector.load %arg4[%c0_27, %c2_28, %c0_29, %c0_30] : memref<1x3x2x128xf32, #tpu.memory_space<vmem>>, vector<1x1x2x128xf32>
      %54 = vector.shape_cast %53 : vector<1x1x2x128xf32> to vector<2x128xf32>
      %55 = vector.shape_cast %52 : vector<2x128xf32> to vector<1x1x2x128xf32>
      tpu.vector_store %arg4[%c0_27, %c2_28, %c0_29, %c0_30], %55 {strides = array<i32>} : memref<1x3x2x128xf32, #tpu.memory_space<vmem>>, vector<1x1x2x128xf32>,
    } else {
    }
    return
  }
  func.func @transform_0(%arg0: i32, %arg1: i32, %arg2: memref<2xf32, #tpu.memory_space<smem>>) -> (i32, i32, i32, i32) {
    %c0_i32 = arith.constant 0 : i32
    %c0_i32_0 = arith.constant 0 : i32
    %c0_i32_1 = arith.constant 0 : i32
    return %arg0, %c0_i32, %arg1, %c0_i32_0 : i32, i32, i32, i32
  }
  func.func @transform_1(%arg0: i32, %arg1: i32, %arg2: memref<2xf32, #tpu.memory_space<smem>>) -> (i32, i32, i32, i32) {
    %c0_i32 = arith.constant 0 : i32
    %c0_i32_0 = arith.constant 0 : i32
    %c0_i32_1 = arith.constant 0 : i32
    return %arg0, %c0_i32, %arg1, %c0_i32_0 : i32, i32, i32, i32
  }
}

</mosaic_0001>

<bundles_post_ra>
// kernel: tpu_custom_call.1
= control target key start
LH: loop header
LB: loop body
LE: loop exit
PB: predicated region body
PF: predicated region fallthrough
CT: control target
= control target key end

     0   :  { %s775_s0 = inlined_call_operand.hbm [shape: f32[2], index: 0, kind: input, shape index: {}]   ;;  %s776_s1 = inlined_call_operand.hbm [shape: f32[2,3,2,128], index: 1, kind: input, shape index: {}]   ;;  %s777_s2 = inlined_call_operand.hbm [shape: f32[2,3,2,128], index: 2, kind: output, shape index: {}]  }
   0x1   :  { %s424_s11 = scalar_lea.hbm %s775_s0, 16 }
   0x2   :  { %p425_p0 = scmp.ne.s32.totalorder %s775_s0, %s424_s11  ;;  %p428_p1 = scmp.lt.u32.totalorder %s424_s11, %s775_s0 }
   0x4   :  { %p430_p2 = pnand %p428_p1, %p425_p0 }
   0x6   :  { %433 = shalt.err (!%p430_p2)  }
   0x7   :  { %s550_s16 = smov [#allocation3]  }
   0x8   :  { %8 = dma.hbm_to_smem %s775_s0, 16, %s550_s16, [#allocation2] }
   0x9   :  { %516 = dma.done.wait [#allocation2], 16 }
   0xa   :  { %517 = vsyncadd [#allocation2], 4294967280 }
   0xb   :  { %10 = sfence }
   0xc   :  { %11 = vsyncpa [#allocation5], 0 }
   0xd   :  { %13 = vsyncpa [#allocation5 + $0x1], 0 }
   0xe   :  { %14 = vsyncpa [#allocation6], 0 }
   0xf   :  { %16 = vsyncpa [#allocation6 + $0x1], 0  ;;  %s584_s19 = smov 0   ;;  %s586_s20 = smov 0  }
  0x10   :  { %s588_s21 = smov 0   ;;  %s590_s22 = smov 0  }
  0x11   :  { %s592_s23 = smov 0   ;;  %s594_s24 = smov 0  }
  0x12 LB: > { %s334_s0 = sadd.s32 4294967295, %s548_s24   ;;  %s335_s25 = sadd.s32 4294967294, %s548_s24   ;;  %s548_s24 = sphi %s594_s24, %s22_s24   ;;  %s544_s23 = sphi %s592_s23, %s792_s23   ;;  %s540_s22 = sphi %s590_s22, %s791_s22   ;;  %s536_s21 = sphi %s588_s21, %s790_s21   ;;  %s532_s20 = sphi %s586_s20, %s789_s20   ;;  %s528_s19 = sphi %s584_s19, %s788_s19  }
  0x13   : > { %s34_s26 = sadd.s32 1, %s544_s23  ;;  %s43_s27 = sadd.s32 1, %s536_s21 }
  0x14   : > { %p36_p3 = scmp.ge.s32.totalorder %s34_s26, 2  ;;  %p50_p4 = scmp.ne.s32.totalorder %s536_s21, %s532_s20 }
  0x15   : > { %p51_p5 = scmp.eq.s32.totalorder %s548_s24, 0  ;;  %p56_p6 = scmp.ne.s32.totalorder %s532_s20, %s528_s19 }
  0x16   : > { %s794_s26 = smov (%p36_p3, %s34_s26), 0  ;;  %p57_p8 = scmp.eq.s32.totalorder %s334_s0, 0 }
  0x17   : > { %p625_p7 = por %p51_p5, %p50_p4  ;;  %s38_s29 = ssub.s32 %s544_s23, %s794_s26 }
  0x18   : > { %p82_p9 = scmp.eq.s32.totalorder %s334_s0, 1  ;;  %p41_p10 = scmp.eq.s32.totalorder %s38_s29, 0 }
  0x19   : > { %p631_p11 = por %p57_p8, %p56_p6  ;;  %p88_p13 = scmp.eq.s32.totalorder %s335_s25, 1 }
  0x1a   : > { %p635_p12 = por %p82_p9, %p50_p4  ;;  %p365_p2 = scmp.lt.s32.totalorder %s548_s24, 2 }
  0x1b   : > { %s640_s4 = scalar_select %p41_p10, %s536_s21, %s43_s27  }
  0x1c   : > { %s781_s3 = scalar_select %p635_p12, 1, 0 }
  0x1d   : > { %p642_p0 = por %p88_p13, %p56_p6  ;;  %s108_s6 = sand.u32 1, %s536_s21  }
  0x1e   : > { %s349_s7 = smul.u32 6, %s108_s6  ;;  %p652_p3 = pnand %p365_p2, %p625_p7 }
  0x1f   : > { %s782_s5 = scalar_select %p642_p0, 1, 0 }
  0x20   : > { %s350_s8 = smul.u32 96, %s544_s23  ;;  %s112_s13 = scalar_lea.vmem [#allocation4], %s349_s7 }
  0x21   : > { %s120_s14 = sshll.u32 %s112_s13, 4  ;;  %s664_s15 = scalar_lea.sflag [#allocation5], %s108_s6  ;;  %s661_s14 = int_to_ptr.vmem [resolvable:$true] %s120_s14 }
  0x22   : > { %s659_s12 = scalar_lea.hbm %s776_s1, %s350_s8  ;;  %p436_p6 = pneg %p652_p3 }
  0x23   : > { %s434_s16 = scalar_lea.hbm %s659_s12, 96  ;;  %s439_s0 = scalar_lea.hbm %s776_s1, 192 }
  0x24   : > { %p435_p5 = scmp.ne.s32.totalorder %s659_s12, %s434_s16  ;;  %p440_p9 = scmp.lt.u32.totalorder %s659_s12, %s776_s1 }
  0x25   : > { %p441_p10 = scmp.lt.u32.totalorder %s439_s0, %s434_s16  ;;  %p443_p2 = scmp.lt.u32.totalorder %s434_s16, %s659_s12 }
  0x26   : > { %p437_p7 = pnand %p436_p6, %p435_p5 }
  0x27   : > { %p442_p13 = por %p441_p10, %p440_p9 }
  0x28   : > { %p438_p8 = pneg %p437_p7 }
  0x29   : > { %p444_p1 = por %p443_p2, %p442_p13 }
  0x2b   : > { %p445_p4 = pnand %p444_p1, %p438_p8 }
  0x2d   : > { %448 = shalt.err (!%p445_p4)
}
  0x2e   : > { %s449_s28 = scalar_lea.vmem %s661_s14, 96  ;;  %s551_s29 = smov [#allocation4]  }
  0x2f   : > { %p450_p5 = scmp.ne.s32.totalorder %s661_s14, %s449_s28  ;;  %s454_s6 = sshll.u32 %s551_s29, 4  ;;  %s455_s6 = int_to_ptr.vmem [resolvable:$false] %s454_s6 }
  0x30   : > { %s456_s7 = scalar_lea.vmem %s455_s6, 192  ;;  %p457_p12 = scmp.lt.s32.totalorder %s661_s14, %s455_s6 }
  0x31   : > { %p452_p7 = pnand %p450_p5, %p436_p6  ;;  %p458_p9 = scmp.lt.s32.totalorder %s456_s7, %s449_s28 }
  0x33   : > { %p453_p0 = pneg %p452_p7  ;;  %p459_p10 = por %p458_p9, %p457_p12 }
  0x35   : > { %p460_p13 = pnand %p459_p10, %p453_p0 }
  0x37   : > { %463 = shalt.err (!%p460_p13)
}
  0x38   : > { %s552_s8 = smov 32   ;;  %s553_s10 = smov 2  }
  0x39   : > { %360 = dma.hbm_to_vmem [thread:$0]  (!%p652_p3), %s659_s12, 96, %s661_s14, %s664_s15, %s552_s8, %s552_s8, %s553_s10  }
  0x3a   : > { %p128_p1 = scmp.lt.s32.totalorder %s548_s24, 3  ;;  %p784_p4 = scmp.ge.s32.totalorder %s548_s24, 1 }
  0x3c   : > { %p129_p6 = pnand %p784_p4, %p128_p1 }
  0x3d   : > { %s696_s11 = sand.u32 (!%p129_p6), 1, %s532_s20  }
  0x3e   : > { %132 = sbr.rel (%p129_p6) target bundleno = 167 (0xa7), region = 24  ;;  %s135_s16 = scalar_lea.sflag (!%p129_p6), [#allocation5], %s696_s11 }
  0x3f   : > { %s351_s13 = smul.u32 (!%p129_p6), 6, %s696_s11 }
  0x41   : > { %s138_s17 = scalar_lea.vmem (!%p129_p6), [#allocation4], %s351_s13 }
  0x45   : > { %519 = dma.done.wait (%p631_p11), %s135_s16, 96  }
  0x46   : > { %521 = vsyncadd (%p631_p11), %s135_s16, 4294967200  ;;  %s705_s9 = sld [smem:[#allocation3 + %s540_s22]]  ;;  %v158_v0 = vld [vmem:[%s138_s17] sm:$0x3]  ;;  %v340_v1 = vld [vmem:[%s138_s17 + $0x2] sm:$0x3] }
  0x47   : > { %v341_v2 = vld [vmem:[%s138_s17 + $0x4] sm:$0x3]  ;;  %v163_v3 = vmin.f32 %v158_v0, %v340_v1  ;;  %v165_v4 = vmax.f32 %v158_v0, %v340_v1  ;;  %s708_s12 = scalar_lea.vmem [#allocation7], %s351_s13 }
  0x49   : > { %v164_v5 = vmin.f32 %v163_v3, %v341_v2  ;;  %v166_v6 = vmax.f32 %v165_v4, %v341_v2 }
  0x4b   : > { %v167_v7 = vsub.f32 %v166_v6, %v164_v5  ;;  %v168_v8 = vadd.f32 %v166_v6, %v164_v5 }
  0x4c   : > { %p170_p12 = scmp.ge.f32.partialorder %s705_s9, 0.0 }
  0x4d   : > { %v169_v9 = vmul.f32 0.5, %v168_v8  ;;  %v175_v10 = vsub.f32 (%p170_p12), 2.0, %v168_v8  ;;  %s180_s30 = ssub.f32 (%p170_p12), 1.0, %s705_s9 }
  0x4e   : > { %173 = sbr.rel (!%p170_p12) target bundleno = 127 (0x7f), region = 32 }
  0x4f   : > { %vm174_vm0 = vcmp.lt.f32.partialorder (%p170_p12), %v169_v9, 0.5  ;;  %v181_v14 = vstv (%p170_p12), %s180_s30  ;;  %v188_v21 = vsub.f32 (%p170_p12), %v158_v0, %v169_v9  ;;  %v194_v22 = vsub.f32 (%p170_p12), %v340_v1, %v169_v9 }
  0x50   : > { %v176_v11 = vsel (%p170_p12), %vm174_vm0, %v168_v8, %v175_v10  ;;  %v201_v23 = vsub.f32 (%p170_p12), %v341_v2, %v169_v9 }
  0x51   : > { %v177_v12 = vadd.f32 (%p170_p12), 1e-06, %v176_v11 }
  0x53   : > { %420 = vrcp.f32 (%p170_p12), %v177_v12 }
  0x5d   : > { %v421_v13 = vpop.eup %420 }
  0x5e   : > { %v179_v15 = vmul.f32 %v421_v13, %v167_v7 }
  0x60   : > { %v182_v16 = vmax.f32 %v179_v15, %v181_v14 }
  0x62   : > { %v183_v17 = vadd.f32 1e-06, %v182_v16 }
  0x64   : > { %422 = vrcp.f32 %v183_v17 }
  0x6e   : > { %v423_v18 = vpop.eup %422 }
  0x6f   : > { %v185_v19 = vmul.f32 %v423_v18, %v183_v17 }
  0x71   : > { %v186_v20 = vsub.f32 2.0, %v185_v19 }
  0x73   : > { %v187_v24 = vmul.f32 %v423_v18, %v186_v20 }
  0x75   : > { %v189_v25 = vmul.f32 %v188_v21, %v187_v24  ;;  %v195_v26 = vmul.f32 %v194_v22, %v187_v24  ;;  %v202_v27 = vmul.f32 %v201_v23, %v187_v24 }
  0x77   : > { %v190_v28 = vadd.f32 %v189_v25, %v169_v9  ;;  %v196_v29 = vadd.f32 %v195_v26, %v169_v9  ;;  %v203_v30 = vadd.f32 %v202_v27, %v169_v9 }
  0x79   : > { %v191_v31 = vmax.f32 %v190_v28, 0.0  ;;  %v197_v32 = vmax.f32 %v196_v29, 0.0  ;;  %v204_v33 = vmax.f32 %v203_v30, 0.0 }
  0x7b   : > { %v192_v34 = vmin.f32 %v191_v31, 1.0  ;;  %v198_v35 = vmin.f32 %v197_v32, 1.0  ;;  %v205_v36 = vmin.f32 %v204_v33, 1.0 }
  0x7d   : > { %193 = vst [vmem:[%s708_s12] sm:$0x3] %v192_v34  ;;  %342 = vst [vmem:[%s708_s12 + $0x2] sm:$0x3] %v198_v35 }
  0x7e   : > { %343 = vst [vmem:[%s708_s12 + $0x4] sm:$0x3] %v205_v36 }
  0x7f PF: > { %p208_p11 = scmp.lt.f32.partialorder %s705_s9, 0.0 }
  0x80   : > { %s212_s14 = sadd.f32 (%p208_p11), 1.0, %s705_s9  ;;  %v213_v37 = vsub.f32 (%p208_p11), %v158_v0, %v169_v9  ;;  %v220_v38 = vsub.f32 (%p208_p11), %v340_v1, %v169_v9  ;;  %v227_v39 = vsub.f32 (%p208_p11), %v341_v2, %v169_v9 }
  0x81   : > { %211 = sbr.rel (!%p208_p11) target bundleno = 141 (0x8d), region = 36 }
  0x82   : > { %v214_v40 = vstv (%p208_p11), %s212_s14 }
  0x83   : > { %v215_v41 = vmul.f32 (%p208_p11), %v214_v40, %v213_v37  ;;  %v221_v42 = vmul.f32 (%p208_p11), %v220_v38, %v214_v40  ;;  %v228_v43 = vmul.f32 (%p208_p11), %v227_v39, %v214_v40 }
  0x85   : > { %v216_v44 = vadd.f32 (%p208_p11), %v215_v41, %v169_v9  ;;  %v222_v45 = vadd.f32 (%p208_p11), %v221_v42, %v169_v9  ;;  %v229_v46 = vadd.f32 (%p208_p11), %v228_v43, %v169_v9 }
  0x87   : > { %v217_v47 = vmax.f32 (%p208_p11), %v216_v44, 0.0  ;;  %v223_v48 = vmax.f32 (%p208_p11), %v222_v45, 0.0  ;;  %v230_v49 = vmax.f32 (%p208_p11), %v229_v46, 0.0 }
  0x89   : > { %v218_v50 = vmin.f32 %v217_v47, 1.0  ;;  %v224_v51 = vmin.f32 %v223_v48, 1.0  ;;  %v231_v52 = vmin.f32 %v230_v49, 1.0 }
  0x8b   : > { %219 = vst [vmem:[%s708_s12] sm:$0x3] %v218_v50  ;;  %344 = vst [vmem:[%s708_s12 + $0x2] sm:$0x3] %v224_v51 }
  0x8c   : > { %345 = vst [vmem:[%s708_s12 + $0x4] sm:$0x3] %v231_v52 }
  0x8d PF: > { %s352_s15 = smul.u32 96, %s540_s22  ;;  %s249_s18 = sshll.u32 %s708_s12, 4  ;;  %s726_s18 = int_to_ptr.vmem [resolvable:$true] %s249_s18 }
  0x8e   : > { %s235_s28 = scalar_lea.sflag [#allocation6], %s696_s11  ;;  %s464_s29 = scalar_lea.vmem %s726_s18, 96 }
  0x8f   : > { %s724_s27 = scalar_lea.hbm %s777_s2, %s352_s15  ;;  %p465_p0 = scmp.ne.s32.totalorder %s726_s18, %s464_s29 }
  0x90   : > { %p785_p3 = scmp.ne.s32.totalorder %s781_s3, 0  ;;  %s554_s6 = smov [#allocation7]  }
  0x91   : > { %s468_s7 = sshll.u32 %s554_s6, 4  ;;  %s469_s7 = int_to_ptr.vmem [resolvable:$false] %s468_s7 }
  0x92   : > { %p466_p8 = pnand %p465_p0, %p785_p3  ;;  %s470_s22 = scalar_lea.vmem %s469_s7, 192 }
  0x93   : > { %p471_p5 = scmp.lt.s32.totalorder %s726_s18, %s469_s7  ;;  %p472_p7 = scmp.lt.s32.totalorder %s470_s22, %s464_s29 }
  0x94   : > { %p467_p2 = pneg %p466_p8 }
  0x95   : > { %p473_p9 = por %p472_p7, %p471_p5 }
  0x97   : > { %p474_p10 = pnand %p473_p9, %p467_p2 }
  0x99   : > { %477 = shalt.err (!%p474_p10)
}
  0x9a   : > { %s478_s8 = scalar_lea.hbm %s724_s27, 96  ;;  %s482_s16 = scalar_lea.hbm %s777_s2, 192 }
  0x9b   : > { %p479_p13 = scmp.ne.s32.totalorder %s724_s27, %s478_s8  ;;  %p483_p6 = scmp.lt.u32.totalorder %s724_s27, %s777_s2 }
  0x9c   : > { %p484_p12 = scmp.lt.u32.totalorder %s482_s16, %s478_s8  ;;  %p486_p0 = scmp.lt.u32.totalorder %s478_s8, %s724_s27 }
  0x9d   : > { %p480_p1 = pnand %p479_p13, %p785_p3 }
  0x9e   : > { %p485_p11 = por %p484_p12, %p483_p6 }
  0x9f   : > { %p481_p4 = pneg %p480_p1 }
  0xa0   : > { %p487_p8 = por %p486_p0, %p485_p11 }
  0xa2   : > { %p488_p2 = pnand %p487_p8, %p481_p4 }
  0xa4   : > { %491 = shalt.err (!%p488_p2)
}
  0xa5   : > { %s555_s12 = smov 32   ;;  %s556_s30 = smov 2  }
  0xa6   : > { %355 = dma.vmem_to_hbm [thread:$0]  (%p785_p3), %s726_s18, 96, %s724_s27, %s235_s28, %s555_s12, %s555_s12, %s556_s30  }
  0xa7 PF: > { %s264_s14 = sand.u32 1, %s528_s19   ;;  %p786_p5 = scmp.ne.s32.totalorder %s782_s5, 0 }
  0xa8   : > { %p787_p7 = scmp.ge.s32.totalorder %s548_s24, 2  ;;  %s265_s15 = scalar_lea.sflag [#allocation6], %s264_s14 }
  0xaa   : > { %p362_p9 = pnand %p787_p7, %p786_p5 }
  0xac   : > { %523 = dma.done.wait (!%p362_p9), %s265_s15, 96  }
  0xad   : > { %525 = vsyncadd (!%p362_p9), %s265_s15, 4294967200  ;;  %s22_s24 = sadd.s32 1, %s548_s24   ;;  %s788_s19 = smov %s532_s20 }
  0xae   : > { %p19_p10 = scmp.ge.s32.totalorder %s22_s24, 4   ;;  %s789_s20 = smov %s536_s21 }
  0xaf   : > { %s790_s21 = smov %s640_s4  ;;  %s791_s22 = smov %s544_s23 }
  0xb0   : > { %s792_s23 = smov %s794_s26  ;;  %21 = sbr.rel (!%p19_p10) target bundleno = 18 (0x12), region = 83 }
  0xb7   :  { %270 = vsyncpa [#allocation5], 1 }
  0xb8   :  { %272 = vsyncpa [#allocation5 + $0x1], 1 }
  0xb9   :  { %273 = vsyncpa [#allocation6], 1 }
  0xba   :  { %275 = vsyncpa [#allocation6 + $0x1], 1 }

</bundles_post_ra>
